<compile_context>
chip_gen: v7x
topology: tpu7x:2x2x1
jax: 0.10.0
libtpu: 0.0.40
codegen_flags: <defaults>
</compile_context>

<pallas_src>
import math
from functools import partial

import jax
import jax.numpy as jnp
from jax.experimental import pallas as pl
from jax.experimental.pallas import tpu as pltpu


def _chip_config():
    """Per-chip (block-target bytes, vmem_limit_bytes, multi_tensorcore)."""
    kind = ""
    try:
        kind = jax.devices()[0].device_kind.lower()
    except Exception:
        pass
    # Conservative default (safe for v5e's 16 MiB default scoped-VMEM limit).
    target_bytes = 2 * 1024 * 1024
    vmem_limit = None
    multi_tc = False
    if "v6" in kind:
        # 2(in)+2(out) double-buffered 4 MiB blocks = 16 MiB < 32 MiB default.
        target_bytes = 4 * 1024 * 1024
    elif "v7" in kind:
        # Higher HBM BW wants bigger blocks; 2x2x8 MiB = 32 MiB of buffers
        # needs the scoped limit raised above the 32 MiB default (64 MiB phys).
        target_bytes = 8 * 1024 * 1024
        vmem_limit = 48 * 1024 * 1024
        multi_tc = True
    return target_bytes, vmem_limit, multi_tc


def _pick_lane(aligned_total):
    """Largest lane width (multiple of 128, <= 4096) dividing the total,
    preferring one whose row count is a multiple of 8 (full sublane packing)."""
    divisors = [128 * k for k in range(32, 0, -1) if aligned_total % (128 * k) == 0]
    for lane in divisors:
        if (aligned_total // lane) % 8 == 0:
            return lane
    return divisors[0]          # aligned_total % 128 == 0 -> non-empty


def _choose_layout(aligned_total, itemsize, target_bytes, multi_tc):
    """Pick (lane, rows, row_block) for a lane-dense (rows, lane) slab."""
    lane = _pick_lane(aligned_total)
    rows = aligned_total // lane

    rb = max(1, target_bytes // (lane * itemsize))
    rb = max(8, (rb // 8) * 8)            # row block multiple of 8
    if multi_tc and rows >= 64:
        # v7x megacore: keep >= ~8 grid steps so both TensorCores get
        # balanced, multi-step pipelines.
        cap = max(8, ((rows // 8) // 8) * 8)
        rb = min(rb, cap)
    rb = min(rb, rows)
    if rows < 8:
        rb = rows                         # block dim equals full array dim -> legal
    return lane, rows, rb


def _pow_posint(s, n):
    """s ** n for integer n >= 1 via square-and-multiply."""
    result = None
    base = s
    while n > 0:
        if n & 1:
            result = base if result is None else result * base
        n >>= 1
        if n:
            base = base * base
    return result


def _bell_jnp(x, inv_a, c_f, b_f):
    """Plain-JAX fallback for tiny tails (same math as the kernel)."""
    u = (x.astype(jnp.float32) - jnp.float32(c_f)) * jnp.float32(inv_a)
    p = jnp.abs(u) ** jnp.float32(2.0 * b_f)
    return (1.0 / (1.0 + p)).astype(x.dtype)


@partial(jax.jit, static_argnums=(1, 2, 3))
def bell_memb_func(x, a, b, c):
    """Apply 1 / (1 + |(x - c)/a|**(2b)) elementwise to `x` (any shape)."""
    orig_shape = x.shape
    dtype = x.dtype
    total = int(math.prod(orig_shape)) if orig_shape else 1
    itemsize = jnp.dtype(dtype).itemsize

    # Scalar parameters are compile-time constants (module __init__ takes
    # Python scalars) -> fold them into the kernel as immediates.
    inv_a = 1.0 / float(a)
    c_f = float(c)
    b_f = float(b)

    b_int = int(b_f) if (b_f.is_integer() and 1.0 <= b_f <= 32.0) else None
    b_half = None
    if b_int is None and (2.0 * b_f).is_integer() and 0.5 <= b_f <= 32.5:
        b_half = int(b_f - 0.5)           # b = b_half + 0.5, b_half >= 0
    newton = itemsize >= 4                # skip refinement for bf16/fp8 outputs

    x_flat = x.reshape(-1)
    aligned = (total // 128) * 128

    if aligned == 0:
        # Tiny (< 128 elements): not worth a kernel launch.
        return _bell_jnp(x_flat, inv_a, c_f, b_f).reshape(orig_shape)

    target_bytes, vmem_limit, multi_tc = _chip_config()
    lane, rows, rb = _choose_layout(aligned, itemsize, target_bytes, multi_tc)

    head = x_flat if aligned == total else x_flat[:aligned]
    x2d = head.reshape(rows, lane)

    def kernel(x_ref, o_ref):
        xv = x_ref[...].astype(jnp.float32)            # cast inside the kernel
        u = (xv - jnp.float32(c_f)) * jnp.float32(inv_a)
        s = u * u                                      # = |(x-c)/a|^2  (>= 0)
        if b_int is not None:
            p = _pow_posint(s, b_int)                  # square-and-multiply
        elif b_half is not None:
            root = jnp.sqrt(s)                         # = |u|
            p = root if b_half == 0 else _pow_posint(s, b_half) * root
        else:
            # s >= 0 by construction: pow == exp(b*log(s)); log(0) -> -inf,
            # exp(-inf) -> 0, matching |0|^(2b) = 0 in the reference.
            p = jnp.exp(jnp.float32(b_f) * jnp.log(s))
        # Clamp so 1+p stays finite (reference would give 0 at overflow; the
        # clamped result differs by < 1e-38).
        d = 1.0 + jnp.minimum(p, jnp.float32(3.0e38))
        r = pl.reciprocal(d, approx=True)              # EUP slot
        if newton:
            r = r * (2.0 - d * r)                      # one Newton step -> ~f32 exact
        o_ref[...] = r.astype(o_ref.dtype)

    cp_kwargs = dict(dimension_semantics=("parallel",))
    if vmem_limit is not None:
        cp_kwargs["vmem_limit_bytes"] = vmem_limit

    grid = (pl.cdiv(rows, rb),)
    out2d = pl.pallas_call(
        kernel,
        out_shape=jax.ShapeDtypeStruct((rows, lane), dtype),
        grid=grid,
        in_specs=[pl.BlockSpec((rb, lane), lambda i: (i, 0))],
        out_specs=pl.BlockSpec((rb, lane), lambda i: (i, 0)),
        compiler_params=pltpu.CompilerParams(**cp_kwargs),
        cost_estimate=pl.CostEstimate(
            flops=12 * aligned,
            transcendentals=aligned,
            bytes_accessed=2 * aligned * itemsize,
        ),
    )(x2d)

    out_head = out2d.reshape(-1)
    if aligned == total:
        out_flat = out_head
    else:
        # Unaligned edge case: <128-element tail computed directly.
        out_tail = _bell_jnp(x_flat[aligned:], inv_a, c_f, b_f)
        out_flat = jnp.concatenate([out_head, out_tail])
    return out_flat.reshape(orig_shape)


if __name__ == "__main__":
    key = jax.random.PRNGKey(0)

    # Scalar parameters (module __init__ takes scalar a, b, c).
    a, b, c = 1.5, 2.0, 0.25

    # Small NCHW input consistent with the elementwise forward pass.
    x = jax.random.normal(key, (2, 4, 16, 16), dtype=jnp.float32)

    out = bell_memb_func(x, a, b, c)
    out = jax.block_until_ready(out)

    # Reference check in plain JAX (same math as the torch forward).
    ref = 1.0 / (1.0 + jnp.abs((x - c) / a) ** (2.0 * b))
    assert out.shape == x.shape
    assert out.dtype == x.dtype
    assert jnp.allclose(out, ref, atol=1e-4, rtol=1e-4), "mismatch vs reference"

    # Also exercise an unaligned size (prefix-kernel + jnp tail path).
    x_odd = jax.random.normal(jax.random.PRNGKey(1), (3, 5, 7, 3), dtype=jnp.float32)
    out_odd = jax.block_until_ready(bell_memb_func(x_odd, a, b, c))
    ref_odd = 1.0 / (1.0 + jnp.abs((x_odd - c) / a) ** (2.0 * b))
    assert jnp.allclose(out_odd, ref_odd, atol=1e-4, rtol=1e-4), "mismatch (unaligned)"

    print("KERNEL_OK")
</pallas_src>

<mosaic_0001>
module attributes {stable_mosaic.version = 11 : i64} {
  func.func @kernel(%arg0: i32, %arg1: memref<8x256xf32, #tpu.memory_space<vmem>>, %arg2: memref<8x256xf32, #tpu.memory_space<vmem>>) attributes {dimension_semantics = [#tpu.dimension_semantics<parallel>], iteration_bounds = array<i64: 1>, scalar_prefetch = 0 : i64, scratch_operands = 0 : i64, tpu.core_type = #tpu.core_type<tc>, window_params = [{transform_indices = @transform_0, window_bounds = array<i64: 8, 256>}, {transform_indices = @transform_1, window_bounds = array<i64: 8, 256>}]} {
    %c0 = arith.constant 0 : index
    %c0_0 = arith.constant 0 : index
    %0 = vector.load %arg1[%c0, %c0_0] : memref<8x256xf32, #tpu.memory_space<vmem>>, vector<8x256xf32>
    %cst = arith.constant 2.500000e-01 : f32
    %1 = vector.broadcast %cst : f32 to vector<8x256xf32>
    %2 = arith.subf %0, %1 : vector<8x256xf32>
    %cst_1 = arith.constant 0.666666686 : f32
    %3 = vector.broadcast %cst_1 : f32 to vector<8x256xf32>
    %4 = arith.mulf %2, %3 : vector<8x256xf32>
    %5 = arith.mulf %4, %4 : vector<8x256xf32>
    %6 = arith.mulf %5, %5 : vector<8x256xf32>
    %cst_2 = arith.constant 3.000000e+38 : f32
    %7 = vector.broadcast %cst_2 : f32 to vector<8x256xf32>
    %8 = arith.minimumf %6, %7 : vector<8x256xf32>
    %cst_3 = arith.constant 1.000000e+00 : f32
    %9 = vector.broadcast %cst_3 : f32 to vector<8x256xf32>
    %10 = arith.addf %9, %8 : vector<8x256xf32>
    %11 = tpu.reciprocal %10 {approx = true} : vector<8x256xf32> -> vector<8x256xf32>
    %12 = arith.mulf %10, %11 : vector<8x256xf32>
    %cst_4 = arith.constant 2.000000e+00 : f32
    %13 = vector.broadcast %cst_4 : f32 to vector<8x256xf32>
    %14 = arith.subf %13, %12 : vector<8x256xf32>
    %15 = arith.mulf %11, %14 : vector<8x256xf32>
    %c0_5 = arith.constant 0 : index
    %c0_6 = arith.constant 0 : index
    %16 = vector.load %arg2[%c0_5, %c0_6] : memref<8x256xf32, #tpu.memory_space<vmem>>, vector<8x256xf32>
    tpu.vector_store %arg2[%c0_5, %c0_6], %15 {strides = array<i32>} : memref<8x256xf32, #tpu.memory_space<vmem>>, vector<8x256xf32>,
    return
  }
  func.func @transform_0(%arg0: i32) -> (i32, i32) {
    %c0_i32 = arith.constant 0 : i32
    %c0_i32_0 = arith.constant 0 : i32
    return %arg0, %c0_i32 : i32, i32
  }
  func.func @transform_1(%arg0: i32) -> (i32, i32) {
    %c0_i32 = arith.constant 0 : i32
    %c0_i32_0 = arith.constant 0 : i32
    return %arg0, %c0_i32 : i32, i32
  }
}

</mosaic_0001>

<bundles_post_ra>
// kernel: bell_memb_func.1
= control target key start
LH: loop header
LB: loop body
LE: loop exit
PB: predicated region body
PF: predicated region fallthrough
CT: control target
= control target key end

     0   :  { %s64_s0 = inlined_call_operand.vmem [shape: f32[8,256], index: 0, kind: input, shape index: {}]   ;;  %s65_s1 = inlined_call_operand.vmem [shape: f32[8,256], index: 1, kind: output, shape index: {}]  }
   0x1   :  { %v8_v0 = vld [vmem:[%s64_s0] sm:$0xff]  ;;  %v9_v1 = vld [vmem:[%s64_s0 + $0x8] sm:$0xff] }
   0x2   :  { %v36_v2 = vadd.f32 -0.25, %v8_v0  ;;  %v37_v3 = vadd.f32 -0.25, %v9_v1 }
   0x4   :  { %v12_v4 = vmul.f32 0.6666667, %v36_v2  ;;  %v13_v5 = vmul.f32 0.6666667, %v37_v3 }
   0x6   :  { %v14_v6 = vmul.f32 %v12_v4, %v12_v4  ;;  %v15_v7 = vmul.f32 %v13_v5, %v13_v5 }
   0x8   :  { %v16_v8 = vmul.f32 %v14_v6, %v14_v6  ;;  %v17_v9 = vmul.f32 %v15_v7, %v15_v7 }
   0xa   :  { %v18_v10 = vmin.f32 %v16_v8, 3e+38  ;;  %v19_v11 = vmin.f32 %v17_v9, 3e+38 }
   0xc   :  { %v20_v12 = vadd.f32 1.0, %v18_v10  ;;  %v21_v13 = vadd.f32 1.0, %v19_v11 }
   0xe   :  { %38 = vrcp.f32 %v20_v12 }
   0xf   :  { %40 = vrcp.f32 %v21_v13 }
  0x18   :  { %v39_v14 = vpop.eup %38 }
  0x19   :  { %v41_v15 = vpop.eup %40  ;;  %v24_v16 = vmul.f32 %v39_v14, %v20_v12 }
  0x1a   :  { %v25_v17 = vmul.f32 %v41_v15, %v21_v13 }
  0x1b   :  { %v26_v18 = vsub.f32 2.0, %v24_v16 }
  0x1c   :  { %v27_v19 = vsub.f32 2.0, %v25_v17 }
  0x1d   :  { %v28_v20 = vmul.f32 %v39_v14, %v26_v18 }
  0x1e   :  { %v29_v21 = vmul.f32 %v41_v15, %v27_v19 }
  0x1f   :  { %30 = vst [vmem:[%s65_s1] sm:$0xff] %v28_v20 }
  0x20   :  { %31 = vst [vmem:[%s65_s1 + $0x8] sm:$0xff] %v29_v21 }

</bundles_post_ra>
